<compile_context>
chip_gen: v7x
topology: tpu7x:2x2x1
jax: 0.10.0
libtpu: 0.0.40
codegen_flags: <defaults>
</compile_context>

<pallas_src>
import math
from functools import partial

import jax
import jax.numpy as jnp
from jax.experimental import pallas as pl
from jax.experimental.pallas import tpu as pltpu


def _combined_extractor_kernel(img_ref, tgt_ref, out_ref, *, d_img, tb, b):
    # img_ref: (tb, d_img) uint8
    # tgt_ref: (b, d_tgt)  resident in VMEM (single copy for all grid steps)
    # out_ref: (tb, d_img + d_tgt) out_dtype
    #
    # x * (1/255) may differ from x / 255 by <= 1 ulp (documented; fine for
    # typical RL feature-extractor tolerances).
    img = img_ref[...].astype(jnp.float32) * jnp.float32(1.0 / 255.0)

    # Two slice stores instead of jnp.concatenate: the image store is
    # lane-aligned whenever d_img is a multiple of 128 (true for the 1024-wide
    # case below); only the small target tail takes a masked partial store.
    # NOTE: for d_img not a multiple of 128 both stores become masked partial
    # stores; pad the image layout in the caller if that ever matters.
    out_ref[:, :d_img] = img.astype(out_ref.dtype)

    # Slice the resident target. Clamp the start so the (padded) last grid
    # step never reads out of bounds of the (b, d_tgt) VMEM buffer.
    start = jnp.minimum(pl.program_id(0) * tb, b - tb)
    out_ref[:, d_img:] = tgt_ref[pl.ds(start, tb), :].astype(out_ref.dtype)


def _device_kind():
    try:
        return jax.devices()[0].device_kind.lower()
    except Exception:  # pragma: no cover - defensive, e.g. odd backends
        return ""


def _plan(b, d_img, d_tgt, kind, batch_tile=None):
    """Pick (batch_tile, vmem_limit_bytes) for the detected TPU generation."""
    d_out = d_img + d_tgt
    # Bytes per batch row held in VMEM with the default 2-deep pipelining on
    # the image input block and the output block.
    per_row = 2 * (d_img * 1 + d_out * 4)
    # Resident target: copied once; count 2 buffers to stay conservative.
    resident_tgt = 2 * b * d_tgt * 4

    is_v7 = "v7" in kind
    # Leave headroom under physical VMEM: 64 MiB on v7x, 128 MiB on v5e/v6e.
    phys_cap = (48 << 20) if is_v7 else (96 << 20)
    budget = max(0, phys_cap - resident_tgt - (2 << 20))

    if batch_tile is None:
        tb = max(1, budget // per_row)
    else:
        tb = int(batch_tile)
    tb = min(tb, b)
    if tb < b:
        # Sublane alignment; 8 is the f32 minimum.  (Review fix: the previous
        # 32-row floor could overshoot the budget for very wide images.)
        tb = max(8, (tb // 8) * 8)
        tb = min(tb, b)

    footprint = tb * per_row + resident_tgt
    # Explicit scoped-VMEM limit sized to the actual footprint (+ margin),
    # never below 32 MiB and never above the per-generation cap.  This fixes
    # the v5e case where the 16 MiB *default* scoped limit would otherwise
    # bound the tile despite 128 MiB of physical VMEM.
    vmem_limit = int(max(32 << 20, min(phys_cap, footprint + (4 << 20))))
    return tb, vmem_limit


def _dimension_semantics(kind, num_steps):
    if "v7" in kind and num_steps >= 2:
        # Only CORE_PARALLEL actually shards grid steps across v7x's two
        # TensorCores (each drives its own HBM DMA stream).
        return (pltpu.CORE_PARALLEL,)
    return ("parallel",)


def combined_extractor(image_nchw, target, *, batch_tile=None, out_dtype=jnp.float32):
    """image_nchw: (B, C, H, W) uint8-ish; target: (B, ...).
    Returns (B, C*H*W + prod(target.shape[1:])) of `out_dtype` (f32 default,
    matching the PyTorch module; pass bf16 to halve HBM write traffic)."""
    b = int(image_nchw.shape[0])
    d_img = math.prod(int(s) for s in image_nchw.shape[1:])
    d_tgt = math.prod(int(s) for s in target.shape[1:])
    d_out = d_img + d_tgt

    # Glue: pure reshapes (torch.nn.Flatten element ordering).  Image stays
    # uint8 so the kernel reads 1 byte/element from HBM.
    img_flat = image_nchw.reshape(b, d_img)
    tgt_flat = target.reshape(b, d_tgt)

    kind = _device_kind()
    tb, vmem_limit = _plan(b, d_img, d_tgt, kind, batch_tile)
    num_steps = pl.cdiv(b, tb)

    kernel = partial(_combined_extractor_kernel, d_img=d_img, tb=tb, b=b)

    return pl.pallas_call(
        kernel,
        out_shape=jax.ShapeDtypeStruct((b, d_out), out_dtype),
        grid=(num_steps,),
        in_specs=[
            pl.BlockSpec((tb, d_img), lambda i: (i, 0)),
            # Resident target: constant index_map -> the revolving buffer sees
            # the same block index every step, so it is DMA'd into VMEM once.
            pl.BlockSpec((b, d_tgt), lambda i: (0, 0)),
        ],
        out_specs=pl.BlockSpec((tb, d_out), lambda i: (i, 0)),
        compiler_params=pltpu.CompilerParams(
            dimension_semantics=_dimension_semantics(kind, num_steps),
            vmem_limit_bytes=vmem_limit,
        ),
    )(img_flat, tgt_flat)


if __name__ == "__main__":
    key = jax.random.PRNGKey(0)
    k_img, k_tgt = jax.random.split(key)

    # Shapes consistent with the module's forward:
    #   'image'  : (B, C, H, W) uint8 observation -> flatten(img/255)
    #   'target' : (B, 16) float observation      -> flatten(target)
    B, C, H, W = 2, 4, 16, 16
    D_TGT = 16

    image = jax.random.randint(k_img, (B, C, H, W), 0, 256, dtype=jnp.int32).astype(jnp.uint8)
    target = jax.random.normal(k_tgt, (B, D_TGT), dtype=jnp.float32)

    out = jax.block_until_ready(combined_extractor(image, target))

    ref = jnp.concatenate(
        [image.astype(jnp.float32).reshape(B, -1) / 255.0,
         target.reshape(B, -1).astype(jnp.float32)],
        axis=1,
    )
    assert out.shape == (B, C * H * W + D_TGT), out.shape
    assert out.dtype == jnp.float32, out.dtype
    assert jnp.allclose(out, ref, atol=1e-6), "mismatch vs reference (small batch)"

    # Second case: larger batch with an explicit batch tile to exercise the
    # multi-step, software-pipelined grid path (grid=(2,), tiles of 32 rows)
    # and the resident-target in-kernel row slicing.
    B2 = 64
    k_img2, k_tgt2 = jax.random.split(jax.random.PRNGKey(0))
    image2 = jax.random.randint(k_img2, (B2, C, H, W), 0, 256, dtype=jnp.int32).astype(jnp.uint8)
    target2 = jax.random.normal(k_tgt2, (B2, D_TGT), dtype=jnp.float32)

    out2 = jax.block_until_ready(combined_extractor(image2, target2, batch_tile=32))
    ref2 = jnp.concatenate(
        [image2.astype(jnp.float32).reshape(B2, -1) / 255.0,
         target2.reshape(B2, -1).astype(jnp.float32)],
        axis=1,
    )
    assert out2.shape == (B2, C * H * W + D_TGT), out2.shape
    assert jnp.allclose(out2, ref2, atol=1e-6), "mismatch vs reference (tiled batch)"

    print("KERNEL_OK")
</pallas_src>

<mosaic_0001>
module attributes {stable_mosaic.version = 11 : i64} {
  func.func @_combined_extractor_kernel(%arg0: i32, %arg1: memref<2x1024xi8, #tpu.memory_space<vmem>>, %arg2: memref<2x16xf32, #tpu.memory_space<vmem>>, %arg3: memref<2x1040xf32, #tpu.memory_space<vmem>>) attributes {dimension_semantics = [#tpu.dimension_semantics<parallel>], iteration_bounds = array<i64: 1>, scalar_prefetch = 0 : i64, scratch_operands = 0 : i64, tpu.core_type = #tpu.core_type<tc>, window_params = [{transform_indices = @transform_0, window_bounds = array<i64: 2, 1024>}, {pipeline_mode = #tpu.pipeline_mode<synchronous>, transform_indices = @transform_1, window_bounds = array<i64: 2, 16>}, {transform_indices = @transform_2, window_bounds = array<i64: 2, 1040>}]} {
    %c0 = arith.constant 0 : index
    %c0_0 = arith.constant 0 : index
    %0 = vector.load %arg1[%c0, %c0_0] : memref<2x1024xi8, #tpu.memory_space<vmem>>, vector<2x1024xi8>
    %1 = arith.uitofp %0 : vector<2x1024xi8> to vector<2x1024xf32>
    %cst = arith.constant 0.00392156886 : f32
    %2 = vector.broadcast %cst : f32 to vector<2x1024xf32>
    %3 = arith.mulf %1, %2 : vector<2x1024xf32>
    %c0_1 = arith.constant 0 : index
    %c0_2 = arith.constant 0 : index
    %4 = vector.load %arg3[%c0_1, %c0_2] : memref<2x1040xf32, #tpu.memory_space<vmem>>, vector<2x1024xf32>
    tpu.vector_store %arg3[%c0_1, %c0_2], %3 {strides = array<i32>} : memref<2x1040xf32, #tpu.memory_space<vmem>>, vector<2x1024xf32>,
    %c2_i32 = arith.constant 2 : i32
    %5 = arith.muli %arg0, %c2_i32 : i32
    %c0_i32 = arith.constant 0 : i32
    %6 = arith.minsi %5, %c0_i32 : i32
    %7 = arith.index_cast %6 : i32 to index
    %c0_3 = arith.constant 0 : index
    %8 = vector.load %arg2[%7, %c0_3] : memref<2x16xf32, #tpu.memory_space<vmem>>, vector<2x16xf32>
    %c0_4 = arith.constant 0 : index
    %c1024 = arith.constant 1024 : index
    %9 = vector.load %arg3[%c0_4, %c1024] : memref<2x1040xf32, #tpu.memory_space<vmem>>, vector<2x16xf32>
    tpu.vector_store %arg3[%c0_4, %c1024], %8 {strides = array<i32>} : memref<2x1040xf32, #tpu.memory_space<vmem>>, vector<2x16xf32>,
    return
  }
  func.func @transform_0(%arg0: i32) -> (i32, i32) {
    %c0_i32 = arith.constant 0 : i32
    %c0_i32_0 = arith.constant 0 : i32
    return %arg0, %c0_i32 : i32, i32
  }
  func.func @transform_1(%arg0: i32) -> (i32, i32) {
    %c0_i32 = arith.constant 0 : i32
    %c0_i32_0 = arith.constant 0 : i32
    %c0_i32_1 = arith.constant 0 : i32
    return %c0_i32, %c0_i32_0 : i32, i32
  }
  func.func @transform_2(%arg0: i32) -> (i32, i32) {
    %c0_i32 = arith.constant 0 : i32
    %c0_i32_0 = arith.constant 0 : i32
    return %arg0, %c0_i32 : i32, i32
  }
}

</mosaic_0001>

<bundles_post_ra>
// kernel: tpu_custom_call.1
= control target key start
LH: loop header
LB: loop body
LE: loop exit
PB: predicated region body
PF: predicated region fallthrough
CT: control target
= control target key end

     0   :  { %7 = vsyncpa [#allocation3], 0  ;;  %s198_s0 = inlined_call_operand.hbm [shape: u8[2,1024], index: 0, kind: input, shape index: {}]   ;;  %s199_s1 = inlined_call_operand.vmem [shape: f32[2,16], index: 1, kind: input, shape index: {}]   ;;  %s200_s2 = inlined_call_operand.hbm [shape: f32[2,1040], index: 2, kind: output, shape index: {}]  }
   0x1   :  { %8 = vsyncpa [#allocation4], 0  ;;  %s153_s9 = smov [#allocation2]   ;;  %s105_s13 = scalar_lea.hbm %s198_s0, 128 }
   0x2   :  { %s15_s10 = sshll.u32 %s153_s9, 4  ;;  %p106_p0 = scmp.ne.s32.totalorder %s198_s0, %s105_s13  ;;  %s16_s10 = int_to_ptr.vmem [resolvable:$true] %s15_s10 }
   0x3   :  { %p109_p1 = scmp.lt.u32.totalorder %s105_s13, %s198_s0 }
   0x5   :  { %p111_p2 = pnand %p109_p1, %p106_p0 }
   0x7   :  { %114 = shalt.err (!%p111_p2)
}
   0x8   :  { %s115_s18 = scalar_lea.vmem %s16_s10, 128  ;;  %p120_p4 = scmp.lt.s32.totalorder %s16_s10, %s16_s10 }
   0x9   :  { %p116_p3 = scmp.ne.s32.totalorder %s16_s10, %s115_s18  ;;  %p121_p5 = scmp.lt.s32.totalorder %s115_s18, %s115_s18 }
   0xb   :  { %p122_p6 = por %p121_p5, %p120_p4 }
   0xd   :  { %p123_p7 = pnand %p122_p6, %p116_p3 }
   0xf   :  { %126 = shalt.err (!%p123_p7)
}
  0x10   :  { %18 = dma.hbm_to_vmem [thread:$0]  %s198_s0, 128, %s16_s10, [#allocation3]  }
  0x11   :  { %149 = dma.done.wait [#allocation3], 128  }
  0x12   :  { %150 = vsyncadd [#allocation3], 4294967168  ;;  %v154_v0 = vmov 1983009808   ;;  %v48_v2 = vlaneseq  ;;  %vm84_vm0 = vcmask 123904   ;;  %v24_v3 = vld [vmem:[#allocation2] sm:$0xff] }
  0x13   :  { %v46_v1 = vunpack.c.l.s4 %v154_v0  ;;  %v83_v6 = vld [vmem:[%s199_s1] sm:$0x3]  ;;  %v25_v7 = vunpack.c.0.s8 %v24_v3  ;;  %v26_v8 = vunpack.c.1.s8 %v24_v3  ;;  %v27_v9 = vunpack.c.2.s8 %v24_v3  ;;  %s155_s0 = smov [#allocation5]  }
  0x14   :  { %v49_v5 = vshrl.u32 %v48_v2, 7  ;;  %v28_v10 = vunpack.c.3.s8 %v24_v3  ;;  %85 = vst.msk [vmem:[#allocation5 + $0x10] sm:$0x3] %vm84_vm0, %v83_v6  ;;  %s92_s1 = sshll.u32 %s155_s0, 4  ;;  %s93_s1 = int_to_ptr.vmem [resolvable:$true] %s92_s1 }
  0x15   :  { %v47_v4 = vunpack.c.0.s8 %v46_v1  ;;  %v29_v11 = vand.u32 255, %v25_v7  ;;  %v30_v12 = vand.u32 255, %v26_v8  ;;  %v31_v13 = vand.u32 255, %v27_v9  ;;  %s127_s23 = scalar_lea.vmem %s93_s1, 288  ;;  %p132_p9 = scmp.lt.s32.totalorder %s93_s1, %s93_s1 }
  0x16   :  { %v32_v14 = vand.u32 255, %v28_v10  ;;  %p128_p8 = scmp.ne.s32.totalorder %s93_s1, %s127_s23  ;;  %p133_p10 = scmp.lt.s32.totalorder %s127_s23, %s127_s23 }
  0x17   :  { %v50_v15 = vsub.s32 %v47_v4, %v49_v5  ;;  %v33_v16 = vcvt.s32.f32 %v29_v11  ;;  %v34_v17 = vcvt.s32.f32 %v30_v12  ;;  %v35_v18 = vcvt.s32.f32 %v31_v13 }
  0x18   :  { %v36_v19 = vcvt.s32.f32 %v32_v14  ;;  %p134_p11 = por %p133_p10, %p132_p9 }
  0x19   :  { %v37_v20 = vmul.f32 0.003921569, %v33_v16  ;;  %v38_v21 = vmul.f32 0.003921569, %v34_v17  ;;  %v39_v22 = vmul.f32 0.003921569, %v35_v18 }
  0x1a   :  { %v40_v23 = vmul.f32 0.003921569, %v36_v19  ;;  %p135_p12 = pnand %p134_p11, %p128_p8 }
  0x1b   :  { %v51_v24 = vrot.slane %v37_v20, %v50_v15  ;;  %v58_v25 = vrot.slane %v38_v21, %v50_v15  ;;  %v66_v26 = vrot.slane %v39_v22, %v50_v15 }
  0x1c   :  { %v73_v27 = vrot.slane %v40_v23, %v50_v15 }
  0x1d   :  { %v59_v28 = vcombine.low %v51_v24, %v58_v25 }
  0x1e   :  { %v74_v29 = vcombine.low %v66_v26, %v73_v27 }
  0x1f   :  { %77 = vst [vmem:[#allocation5] sm:$0xff] %v59_v28 }
  0x20   :  { %78 = vst [vmem:[#allocation5 + $0x8] sm:$0xff] %v74_v29 }
  0x21   :  { %138 = shalt.err (!%p135_p12)
}
  0x22   :  { %s139_s26 = scalar_lea.hbm %s200_s2, 288 }
  0x23   :  { %p140_p13 = scmp.ne.s32.totalorder %s200_s2, %s139_s26  ;;  %p143_p0 = scmp.lt.u32.totalorder %s139_s26, %s200_s2 }
  0x25   :  { %p145_p1 = pnand %p143_p0, %p140_p13 }
  0x27   :  { %148 = shalt.err (!%p145_p1)
}
  0x28   :  { %95 = dma.vmem_to_hbm [thread:$0]  %s93_s1, 288, %s200_s2, [#allocation4]  }
  0x29   :  { %151 = dma.done.wait [#allocation4], 288  }
  0x2a   :  { %152 = vsyncadd [#allocation4], 4294967008 }
  0x2b   :  { %99 = vsyncpa [#allocation3], 1 }
  0x2c   :  { %100 = vsyncpa [#allocation4], 1 }

</bundles_post_ra>
